<compile_context>
chip_gen: v7x
topology: tpu7x:2x2x1
jax: 0.10.0
libtpu: 0.0.40
codegen_flags: <defaults>
</compile_context>

<pallas_src>
import functools

import jax
import jax.numpy as jnp
from jax.experimental import pallas as pl
from jax.experimental.pallas import tpu as pltpu


def _round_up(x: int, m: int) -> int:
    return ((x + m - 1) // m) * m


def _nk_tiles(d_in, d_out, max_tn, max_tk):
    """Tile sizes / padded extents for the (K, N) = (d_in, d_out_total) dims.

    Depends only on the weight shape (not the batch), so padded/cast weights
    can be prepared once at parameter-setup time, outside the jitted forward.
    """
    tn = min(max_tn, _round_up(d_out, 128))
    tk = min(max_tk, _round_up(d_in, 128))
    Np = _round_up(d_out, tn)
    Kp = _round_up(d_in, tk)
    # Keep >= 2 tiles on the N ("parallel") axis whenever D_out allows it, so
    # both v7x TensorCores get work even when the batch collapses to a single
    # M tile (small-batch weight-streaming regime).
    if Np // tn == 1 and Np >= 256:
        tn = _round_up(Np // 2, 128)
        Np = _round_up(d_out, tn)
    return tn, tk, Np, Kp


def _parallel_fc_kernel(x_ref, w_ref, b_ref, o_ref, acc_ref):
    """One (tm, tn) output tile, accumulating over the K grid axis (axis 2)."""
    k = pl.program_id(2)
    prod = jnp.dot(x_ref[...], w_ref[...], preferred_element_type=jnp.float32)

    @pl.when(k == 0)
    def _first():
        # Write first partial product directly: saves a zero-init store plus a
        # read-modify-write of the accumulator on the first K step.
        acc_ref[...] = prod

    @pl.when(k > 0)
    def _accumulate():
        acc_ref[...] += prod

    # Epilogue: add bias exactly once, cast, lane-dense (tm, tn) store.
    @pl.when(k == pl.num_programs(2) - 1)
    def _finalize():
        o_ref[...] = (acc_ref[...] + b_ref[...].astype(jnp.float32)).astype(
            o_ref.dtype
        )


def prepare_parallel_params(ws, bs, *, mxu_dtype=jnp.bfloat16,
                            max_tn=512, max_tk=1024):
    """Concatenate, pad, and cast per-fc Linear params ONCE at setup time.

    ws[i]: (d_in, d_out_i)  (torch weight transposed),  bs[i]: (d_out_i,)
    Returns (w_pad, b_pad, d_in, d_out_total) ready for parallel_forward.
    Hoisting the pad/cast here avoids re-reading the full weight matrix in HBM
    on every forward call (it roughly doubled traffic in the small-batch
    weight-streaming regime).
    """
    w_cat = jnp.concatenate(ws, axis=1)                       # (d_in, d_out)
    b_cat = jnp.concatenate([b.reshape(-1) for b in bs])[None, :]
    d_in, d_out = w_cat.shape
    tn, tk, Np, Kp = _nk_tiles(d_in, d_out, max_tn, max_tk)
    if mxu_dtype is not None:
        w_cat = w_cat.astype(mxu_dtype)
    # TODO(synk): optional fp8 W_cat path for the v7x weight-streaming regime.
    w_pad = jnp.pad(w_cat, ((0, Kp - d_in), (0, Np - d_out)))
    b_pad = jnp.pad(b_cat.astype(jnp.float32), ((0, 0), (0, Np - d_out)))
    return w_pad, b_pad, d_in, d_out


@functools.partial(
    jax.jit,
    static_argnames=("d_in", "d_out", "max_tm", "max_tn", "max_tk"),
)
def parallel_forward(x, w_pad, b_pad, *, d_in, d_out,
                     max_tm=512, max_tn=512, max_tk=1024):
    """Fused Parellel forward: concat_i(x @ W_i + b_i) == x @ W_cat + b_cat.

    x:     (B, d_in)            (any float dtype; output keeps x's dtype)
    w_pad: (Kp, Np)             prepared by prepare_parallel_params
    b_pad: (1, Np) float32      prepared by prepare_parallel_params
    MXU operand dtype is whatever w_pad was prepared in (bf16 by default);
    accumulation and bias epilogue are f32.
    """
    B, xk = x.shape
    assert xk == d_in, f"x has {xk} features, expected {d_in}"
    out_dtype = x.dtype

    tn, tk, Np, Kp = _nk_tiles(d_in, d_out, max_tn, max_tk)
    assert w_pad.shape == (Kp, Np), (
        "w_pad must be prepared with prepare_parallel_params using the same "
        f"max_tn/max_tk; expected {(Kp, Np)}, got {w_pad.shape}")
    assert b_pad.shape == (1, Np)

    # MXU operand dtype follows the prepared weights (bf16 by default).
    if x.dtype != w_pad.dtype:
        x = x.astype(w_pad.dtype)

    # M tile clamps to the (padded) batch so a tiny batch keeps the whole x
    # block resident and only streams weights.
    tm = min(max_tm, _round_up(B, 8))
    Bp = _round_up(B, tm)

    if (Bp, Kp) != (B, d_in):
        x = jnp.pad(x, ((0, Bp - B), (0, Kp - d_in)))

    grid = (Bp // tm, Np // tn, Kp // tk)

    flops = 2 * Bp * Kp * Np
    bytes_accessed = (
        x.size * x.dtype.itemsize
        + w_pad.size * w_pad.dtype.itemsize
        + b_pad.size * b_pad.dtype.itemsize
        + Bp * Np * jnp.dtype(out_dtype).itemsize
    )

    out_padded = pl.pallas_call(
        _parallel_fc_kernel,
        out_shape=jax.ShapeDtypeStruct((Bp, Np), out_dtype),
        grid_spec=pltpu.PrefetchScalarGridSpec(
            num_scalar_prefetch=0,
            grid=grid,
            in_specs=[
                pl.BlockSpec((tm, tk), lambda i, j, k: (i, k)),   # x tile
                pl.BlockSpec((tk, tn), lambda i, j, k: (k, j)),   # W_cat tile
                pl.BlockSpec((1, tn), lambda i, j, k: (0, j)),    # bias tile
            ],
            out_specs=pl.BlockSpec((tm, tn), lambda i, j, k: (i, j)),
            scratch_shapes=[pltpu.VMEM((tm, tn), jnp.float32)],
        ),
        compiler_params=pltpu.CompilerParams(
            dimension_semantics=("parallel", "parallel", "arbitrary"),
            # Explicit scoped-VMEM limit: v5e defaults to 16 MiB which is too
            # small for 512/1024 tiles; 32 MiB is safe on every generation
            # (v7x has 64 MiB physical per TC) and covers the working set.
            vmem_limit_bytes=32 * 1024 * 1024,
        ),
        cost_estimate=pl.CostEstimate(
            flops=flops, transcendentals=0, bytes_accessed=bytes_accessed
        ),
    )(x, w_pad, b_pad)

    if (Bp, Np) != (B, d_out):
        out_padded = out_padded[:B, :d_out]
    return out_padded


def make_parallel_params(key, d_in, d_outs, dtype=jnp.float32):
    """Deterministically init per-fc Linear params (PyTorch-style uniform)."""
    ws, bs = [], []
    bound = 1.0 / float(jnp.sqrt(jnp.float32(d_in)))
    for i, d_out in enumerate(d_outs):
        kw, kb = jax.random.split(jax.random.fold_in(key, i))
        # torch Linear weight is (d_out, d_in); store transposed for x @ W.
        w = jax.random.uniform(kw, (d_in, d_out), dtype, -bound, bound)
        b = jax.random.uniform(kb, (d_out,), dtype, -bound, bound)
        ws.append(w)
        bs.append(b)
    return ws, bs


def _reference(x, ws, bs):
    return jnp.concatenate(
        [
            jnp.dot(x, w, precision=jax.lax.Precision.HIGHEST) + b[None, :]
            for w, b in zip(ws, bs)
        ],
        axis=1,
    )


if __name__ == "__main__":
    key = jax.random.PRNGKey(0)
    k1, k2, k3, k4, k5, k6 = jax.random.split(key, 6)

    # Case 1: small ragged shapes, f32 MXU path (exact), single grid step,
    # exercising the zero-pad + output-slice edge path.
    B1, d_in1, d_outs1 = 10, 100, (16, 32, 16)
    x1 = jax.random.normal(k1, (B1, d_in1), jnp.float32)
    ws1, bs1 = make_parallel_params(k2, d_in1, d_outs1)
    w1, b1, di1, do1 = prepare_parallel_params(ws1, bs1, mxu_dtype=None)
    out1 = jax.block_until_ready(
        parallel_forward(x1, w1, b1, d_in=di1, d_out=do1))
    ref1 = _reference(x1, ws1, bs1)
    assert out1.shape == (B1, sum(d_outs1))
    assert jnp.allclose(out1, ref1, atol=1e-4, rtol=1e-4)

    # Case 2: default bf16 MXU operands, small tile caps so the full (M, N, K)
    # grid is exercised (multi-step K accumulation + multi-tile M and N).
    B2, d_in2, d_outs2 = 24, 384, (96, 160, 128)
    x2 = jax.random.normal(k3, (B2, d_in2), jnp.float32)
    ws2, bs2 = make_parallel_params(k4, d_in2, d_outs2)
    w2, b2, di2, do2 = prepare_parallel_params(ws2, bs2, max_tn=128, max_tk=128)
    out2 = jax.block_until_ready(
        parallel_forward(x2, w2, b2, d_in=di2, d_out=do2,
                         max_tm=16, max_tn=128, max_tk=128))
    ref2 = _reference(x2, ws2, bs2)
    assert out2.shape == (B2, sum(d_outs2))
    assert jnp.allclose(out2, ref2, atol=3e-2, rtol=3e-2)   # bf16 operands

    # Case 3: default caps, small batch (weight-streaming regime) with the N
    # axis auto-split into >= 2 tiles (keeps both v7x TensorCores busy).
    B3, d_in3, d_outs3 = 4, 256, (256, 256)
    x3 = jax.random.normal(k5, (B3, d_in3), jnp.float32)
    ws3, bs3 = make_parallel_params(k6, d_in3, d_outs3)
    w3, b3, di3, do3 = prepare_parallel_params(ws3, bs3)
    out3 = jax.block_until_ready(
        parallel_forward(x3, w3, b3, d_in=di3, d_out=do3))
    ref3 = _reference(x3, ws3, bs3)
    assert out3.shape == (B3, sum(d_outs3))
    assert jnp.allclose(out3, ref3, atol=3e-2, rtol=3e-2)   # bf16 operands

    print("KERNEL_OK")
</pallas_src>

<mosaic_0001>
module attributes {stable_mosaic.version = 11 : i64} {
  func.func @_parallel_fc_kernel(%arg0: i32, %arg1: i32, %arg2: i32, %arg3: memref<16x128xf32, #tpu.memory_space<vmem>>, %arg4: memref<128x128xf32, #tpu.memory_space<vmem>>, %arg5: memref<1x128xf32, #tpu.memory_space<vmem>>, %arg6: memref<16x128xf32, #tpu.memory_space<vmem>>, %arg7: memref<16x128xf32, #tpu.memory_space<vmem>>) attributes {dimension_semantics = [#tpu.dimension_semantics<parallel>, #tpu.dimension_semantics<parallel>, #tpu.dimension_semantics<arbitrary>], iteration_bounds = array<i64: 1, 1, 1>, scalar_prefetch = 0 : i64, scratch_operands = 1 : i64, tpu.core_type = #tpu.core_type<tc>, window_params = [{transform_indices = @transform_0, window_bounds = array<i64: 16, 128>}, {transform_indices = @transform_1, window_bounds = array<i64: 128, 128>}, {transform_indices = @transform_2, window_bounds = array<i64: 1, 128>}, {transform_indices = @transform_3, window_bounds = array<i64: 16, 128>}]} {
    %c0 = arith.constant 0 : index
    %c0_0 = arith.constant 0 : index
    %0 = vector.load %arg3[%c0, %c0_0] : memref<16x128xf32, #tpu.memory_space<vmem>>, vector<16x128xf32>
    %c0_1 = arith.constant 0 : index
    %c0_2 = arith.constant 0 : index
    %1 = vector.load %arg4[%c0_1, %c0_2] : memref<128x128xf32, #tpu.memory_space<vmem>>, vector<128x128xf32>
    %cst = arith.constant dense<0.000000e+00> : vector<16x128xf32>
    %2 = tpu.matmul %0, %1, %cst {dimension_numbers = #tpu.dot_dimension_numbers<[1], [0], [0], [1], [0, 0, 1, 1], [], []>} : vector<16x128xf32>, vector<128x128xf32>, vector<16x128xf32> -> vector<16x128xf32>
    %c0_i32 = arith.constant 0 : i32
    %3 = arith.cmpi eq, %arg2, %c0_i32 : i32
    %4 = arith.extui %3 : i1 to i32
    %c0_i32_3 = arith.constant 0 : i32
    %5 = arith.cmpi ne, %4, %c0_i32_3 : i32
    scf.if %5 {
      %c0_8 = arith.constant 0 : index
      %c0_9 = arith.constant 0 : index
      %12 = vector.load %arg7[%c0_8, %c0_9] : memref<16x128xf32, #tpu.memory_space<vmem>>, vector<16x128xf32>
      tpu.vector_store %arg7[%c0_8, %c0_9], %2 {strides = array<i32>} : memref<16x128xf32, #tpu.memory_space<vmem>>, vector<16x128xf32>,
    } else {
    }
    %c0_i32_4 = arith.constant 0 : i32
    %6 = arith.cmpi sgt, %arg2, %c0_i32_4 : i32
    %7 = arith.extui %6 : i1 to i32
    %c0_i32_5 = arith.constant 0 : i32
    %8 = arith.cmpi ne, %7, %c0_i32_5 : i32
    scf.if %8 {
      %c0_8 = arith.constant 0 : index
      %c0_9 = arith.constant 0 : index
      %12 = vector.load %arg7[%c0_8, %c0_9] : memref<16x128xf32, #tpu.memory_space<vmem>>, vector<16x128xf32>
      %13 = arith.addf %12, %2 : vector<16x128xf32>
      %c0_10 = arith.constant 0 : index
      %c0_11 = arith.constant 0 : index
      %14 = vector.load %arg7[%c0_10, %c0_11] : memref<16x128xf32, #tpu.memory_space<vmem>>, vector<16x128xf32>
      tpu.vector_store %arg7[%c0_10, %c0_11], %13 {strides = array<i32>} : memref<16x128xf32, #tpu.memory_space<vmem>>, vector<16x128xf32>,
    } else {
    }
    %c0_i32_6 = arith.constant 0 : i32
    %9 = arith.cmpi eq, %arg2, %c0_i32_6 : i32
    %10 = arith.extui %9 : i1 to i32
    %c0_i32_7 = arith.constant 0 : i32
    %11 = arith.cmpi ne, %10, %c0_i32_7 : i32
    scf.if %11 {
      %c0_8 = arith.constant 0 : index
      %c0_9 = arith.constant 0 : index
      %12 = vector.load %arg7[%c0_8, %c0_9] : memref<16x128xf32, #tpu.memory_space<vmem>>, vector<16x128xf32>
      %c0_10 = arith.constant 0 : index
      %c0_11 = arith.constant 0 : index
      %13 = vector.load %arg5[%c0_10, %c0_11] : memref<1x128xf32, #tpu.memory_space<vmem>>, vector<1x128xf32>
      %14 = vector.broadcast %13 : vector<1x128xf32> to vector<16x128xf32>
      %15 = arith.addf %12, %14 : vector<16x128xf32>
      %c0_12 = arith.constant 0 : index
      %c0_13 = arith.constant 0 : index
      %16 = vector.load %arg6[%c0_12, %c0_13] : memref<16x128xf32, #tpu.memory_space<vmem>>, vector<16x128xf32>
      tpu.vector_store %arg6[%c0_12, %c0_13], %15 {strides = array<i32>} : memref<16x128xf32, #tpu.memory_space<vmem>>, vector<16x128xf32>,
    } else {
    }
    return
  }
  func.func @transform_0(%arg0: i32, %arg1: i32, %arg2: i32) -> (i32, i32) {
    %c0_i32 = arith.constant 0 : i32
    return %arg0, %arg2 : i32, i32
  }
  func.func @transform_1(%arg0: i32, %arg1: i32, %arg2: i32) -> (i32, i32) {
    %c0_i32 = arith.constant 0 : i32
    return %arg2, %arg1 : i32, i32
  }
  func.func @transform_2(%arg0: i32, %arg1: i32, %arg2: i32) -> (i32, i32) {
    %c0_i32 = arith.constant 0 : i32
    %c0_i32_0 = arith.constant 0 : i32
    return %c0_i32, %arg1 : i32, i32
  }
  func.func @transform_3(%arg0: i32, %arg1: i32, %arg2: i32) -> (i32, i32) {
    %c0_i32 = arith.constant 0 : i32
    return %arg0, %arg1 : i32, i32
  }
}

</mosaic_0001>

<bundles_post_ra>
// kernel: parallel_forward.1
= control target key start
LH: loop header
LB: loop body
LE: loop exit
PB: predicated region body
PF: predicated region fallthrough
CT: control target
= control target key end

     0   :  { %8 = vsyncpa [#allocation4], 0  ;;  %s372_s0 = inlined_call_operand.vmem [shape: f32[16,128], index: 0, kind: input, shape index: {}]   ;;  %s373_s1 = inlined_call_operand.hbm [shape: f32[128,128], index: 1, kind: input, shape index: {}]   ;;  %s374_s2 = inlined_call_operand.vmem [shape: f32[1,128], index: 2, kind: input, shape index: {}]   ;;  %s375_s3 = inlined_call_operand.hbm [shape: f32[16,128], index: 3, kind: output, shape index: {}]  }
   0x1   :  { %9 = vsyncpa [#allocation5], 0  ;;  %s309_s12 = smov [#allocation3]   ;;  %s261_s16 = scalar_lea.hbm %s373_s1, 2048 }
   0x2   :  { %s17_s13 = sshll.u32 %s309_s12, 4  ;;  %p262_p0 = scmp.ne.s32.totalorder %s373_s1, %s261_s16  ;;  %s18_s13 = int_to_ptr.vmem [resolvable:$true] %s17_s13 }
   0x3   :  { %p265_p1 = scmp.lt.u32.totalorder %s261_s16, %s373_s1 }
   0x5   :  { %p267_p2 = pnand %p265_p1, %p262_p0 }
   0x7   :  { %270 = shalt.err (!%p267_p2)
}
   0x8   :  { %s271_s21 = scalar_lea.vmem %s18_s13, 2048  ;;  %p276_p4 = scmp.lt.s32.totalorder %s18_s13, %s18_s13 }
   0x9   :  { %p272_p3 = scmp.ne.s32.totalorder %s18_s13, %s271_s21  ;;  %p277_p5 = scmp.lt.s32.totalorder %s271_s21, %s271_s21 }
   0xb   :  { %p278_p6 = por %p277_p5, %p276_p4 }
   0xd   :  { %p279_p7 = pnand %p278_p6, %p272_p3 }
   0xf   :  { %282 = shalt.err (!%p279_p7)
}
  0x10   :  { %s310_s22 = smov 128   ;;  %s311_s23 = smov 8  }
  0x11   :  { %23 = dma.hbm_to_vmem [thread:$0]  %s373_s1, 2048, %s18_s13, [#allocation4], %s310_s22, %s310_s22, %s311_s23  }
  0x12   :  { %305 = dma.done.wait [#allocation4], 2048  }
  0x13   :  { %306 = vsyncadd [#allocation4], 4294965248  ;;  %v31_v0 = vld [vmem:[#allocation3] sm:$0xff]  ;;  %v32_v1 = vld [vmem:[#allocation3 + $0x8] sm:$0xff]  ;;  %s312_s4 = smov [#allocation6]  }
  0x14   :  { %v33_v2 = vld [vmem:[#allocation3 + $0x10] sm:$0xff]  ;;  %v225_v3 = vpack.c.bf16 %v32_v1, %v31_v0  ;;  %v34_v4 = vld [vmem:[#allocation3 + $0x18] sm:$0xff]  ;;  %v35_v6 = vld [vmem:[#allocation3 + $0x20] sm:$0xff]  ;;  %s159_s5 = sshll.u32 %s312_s4, 4  ;;  %s160_s5 = int_to_ptr.vmem [resolvable:$true] %s159_s5 }
  0x15   :  { %v229_v5 = vpack.c.bf16 %v34_v4, %v33_v2  ;;  %v36_v7 = vld [vmem:[#allocation3 + $0x28] sm:$0xff]  ;;  %v29_v9 = vld [vmem:[%s372_s0] sm:$0xff]  ;;  %v38_v11 = vld [vmem:[#allocation3 + $0x38] sm:$0xff]  ;;  %s283_s6 = scalar_lea.vmem %s160_s5, 256  ;;  %p288_p9 = scmp.lt.s32.totalorder %s160_s5, %s160_s5 }
  0x16   :  { %226 = vmatprep.subr.bf16.mxu0 %v225_v3  ;;  %v233_v8 = vpack.c.bf16 %v36_v7, %v35_v6  ;;  %v37_v10 = vld [vmem:[#allocation3 + $0x30] sm:$0xff]  ;;  %222 = vmatprep.mubr.f32.mxu0 %v29_v9  ;;  %v39_v13 = vld [vmem:[#allocation3 + $0x40] sm:$0xff]  ;;  %v40_v14 = vld [vmem:[#allocation3 + $0x48] sm:$0xff]  ;;  %p284_p8 = scmp.ne.s32.totalorder %s160_s5, %s283_s6  ;;  %p289_p10 = scmp.lt.s32.totalorder %s283_s6, %s283_s6 }
  0x17   :  { %228 = vmatpush3.bf16.msra.mxu0 %v225_v3  ;;  %v237_v12 = vpack.c.bf16 %v38_v11, %v37_v10  ;;  %v241_v15 = vpack.c.bf16 %v40_v14, %v39_v13  ;;  %v41_v16 = vld [vmem:[#allocation3 + $0x50] sm:$0xff]  ;;  %v42_v17 = vld [vmem:[#allocation3 + $0x58] sm:$0xff]  ;;  %v43_v19 = vld [vmem:[#allocation3 + $0x60] sm:$0xff] }
  0x18   :  { %230 = vmatprep.subr.bf16.mxu0 %v229_v5  ;;  %v245_v18 = vpack.c.bf16 %v42_v17, %v41_v16  ;;  %v44_v20 = vld [vmem:[#allocation3 + $0x68] sm:$0xff]  ;;  %v45_v22 = vld [vmem:[#allocation3 + $0x70] sm:$0xff]  ;;  %v46_v23 = vld [vmem:[#allocation3 + $0x78] sm:$0xff]  ;;  %p290_p11 = por %p289_p10, %p288_p9 }
  0x19   :  { %v249_v21 = vpack.c.bf16 %v44_v20, %v43_v19  ;;  %v253_v24 = vpack.c.bf16 %v46_v23, %v45_v22  ;;  %v30_v25 = vld [vmem:[%s372_s0 + $0x8] sm:$0xff]  ;;  %v171_v26 = vld [vmem:[%s374_s2] ss:$0 sm:$0xff] }
  0x1a   :  { %p291_p12 = pnand %p290_p11, %p284_p8 }
  0x1b   :  { %232 = vmatpush3.bf16.msra.mxu0 %v229_v5 }
  0x1c   :  { %234 = vmatprep.subr.bf16.mxu0 %v233_v8 }
  0x1f   :  { %236 = vmatpush3.bf16.msra.mxu0 %v233_v8 }
  0x20   :  { %238 = vmatprep.subr.bf16.mxu0 %v237_v12 }
  0x23   :  { %240 = vmatpush3.bf16.msra.mxu0 %v237_v12 }
  0x24   :  { %242 = vmatprep.subr.bf16.mxu0 %v241_v15 }
  0x27   :  { %244 = vmatpush3.bf16.msra.mxu0 %v241_v15 }
  0x28   :  { %246 = vmatprep.subr.bf16.mxu0 %v245_v18 }
  0x2b   :  { %248 = vmatpush3.bf16.msra.mxu0 %v245_v18 }
  0x2c   :  { %250 = vmatprep.subr.bf16.mxu0 %v249_v21 }
  0x2f   :  { %252 = vmatpush3.bf16.msra.mxu0 %v249_v21 }
  0x30   :  { %254 = vmatprep.subr.bf16.mxu0 %v253_v24 }
  0x33   :  { %256 = vmatpush3.bf16.msra.mxu0 %v253_v24 }
  0x36   :  { %223 = vmatmul.mubr.f32.vlgmr.msra.gmra.mrb[0].mxu0 %v30_v25 }
 0x109   :  { %v224_v27 = vpop.f32.mrb[0].mxu0 }
 0x10a   :  { %v151_v28 = vadd.f32 %v224_v27, %v171_v26  ;;  %v113_v29 = vpop.f32.mrb[1].mxu0 }
 0x10b   :  { %v150_v30 = vadd.f32 %v171_v26, %v113_v29 }
 0x10c   :  { %153 = vst [vmem:[#allocation6 + $0x8] sm:$0xff] %v151_v28 }
 0x10d   :  { %152 = vst [vmem:[#allocation6] sm:$0xff] %v150_v30 }
 0x10e   :  { %294 = shalt.err (!%p291_p12)
}
 0x10f   :  { %s295_s2 = scalar_lea.hbm %s375_s3, 256 }
 0x110   :  { %p296_p13 = scmp.ne.s32.totalorder %s375_s3, %s295_s2  ;;  %p299_p0 = scmp.lt.u32.totalorder %s295_s2, %s375_s3 }
 0x112   :  { %p301_p1 = pnand %p299_p0, %p296_p13 }
 0x114   :  { %304 = shalt.err (!%p301_p1)
}
 0x115   :  { %165 = dma.vmem_to_hbm [thread:$0]  %s160_s5, 256, %s375_s3, [#allocation5], %s310_s22, %s310_s22, %s311_s23  }
 0x116   :  { %307 = dma.done.wait [#allocation5], 256  }
 0x117   :  { %308 = vsyncadd [#allocation5], 4294967040 }
 0x118   :  { %169 = vsyncpa [#allocation4], 1 }
 0x119   :  { %170 = vsyncpa [#allocation5], 1 }

</bundles_post_ra>
